<compile_context>
chip_gen: v7x
topology: tpu7x:2x2x1
jax: 0.10.0
libtpu: 0.0.40
codegen_flags: <defaults>
</compile_context>

<pallas_src>
import math

import jax
import jax.numpy as jnp
from jax.experimental import pallas as pl
from jax.experimental.pallas import tpu as pltpu


# ---------------------------------------------------------------------------
# Backward kernel: o = (-alpha) * g
# ---------------------------------------------------------------------------

def _grl_bwd_kernel(g_ref, neg_alpha_ref, o_ref):
    # Scale in f32 (required on v5e: no bf16 VPU; free elsewhere), cast back.
    o_ref[...] = (g_ref[...].astype(jnp.float32) * neg_alpha_ref[0]).astype(o_ref.dtype)


def _vmem_capacity_bytes():
    try:
        return int(pltpu.get_tpu_info().vmem_capacity_bytes)
    except Exception:
        return 64 * 1024 * 1024  # conservative (v7x per-TC) fallback


def _neg_scale_pallas(g, alpha, *, max_block_bytes=None):
    """Return (-alpha) * g via a tiled, lane-dense Pallas kernel (any shape/float dtype)."""
    orig_shape = g.shape
    orig_dtype = g.dtype
    total = math.prod(orig_shape) if orig_shape else 1
    if total == 0:
        return jnp.zeros(orig_shape, orig_dtype)

    # Runtime scalar: negate outside (trivial XLA op), multiply inside the kernel.
    neg_alpha = (-jnp.asarray(alpha, jnp.float32)).reshape((1,))

    itemsize = orig_dtype.itemsize
    sublane = {4: 8, 2: 16, 1: 32}.get(itemsize, 8)  # dtype-aware sublane packing

    # Lane axis: largest multiple-of-128 width that divides the element count
    # (zero-copy path).  Odd totals fall back to lane=128 with one minimal pad.
    lane = None
    for cand in (4096, 2048, 1024, 512, 256, 128):
        if total % cand == 0:
            lane = cand
            break
    needs_pad = lane is None
    if needs_pad:
        lane = 128
    rows = pl.cdiv(total, lane)

    flat = g.reshape(-1)                      # free (contiguous) reshape
    if needs_pad:
        flat = jnp.pad(flat, (0, rows * lane - total))
    slab = flat.reshape(rows, lane)

    # Generation-aware block sizing: ~VMEM/8 per block (in+out, double-buffered).
    vmem_cap = _vmem_capacity_bytes()
    if max_block_bytes is None:
        block_target = (vmem_cap * 3 // 5) // 5      # ≈7.7 MiB on v7x, ≈15 MiB on v5e/v6e
    else:
        block_target = int(max_block_bytes)
    block_target = max(block_target, lane * sublane * itemsize)

    tile_m_cap = max(sublane, (block_target // (lane * itemsize)) // sublane * sublane)
    tile_m = rows if rows <= tile_m_cap else tile_m_cap
    grid = pl.cdiv(rows, tile_m)

    # v7x megacore: make sure a "large" single-block case still splits across the
    # two TensorCores (harmless on v5e/v6e).
    if grid == 1 and rows > 2 * sublane and tile_m * lane * itemsize >= (1 << 20):
        tile_m = ((pl.cdiv(rows, 2) + sublane - 1) // sublane) * sublane
        grid = pl.cdiv(rows, tile_m)

    block_bytes = tile_m * lane * itemsize
    vmem_limit = min(vmem_cap * 3 // 4, 4 * block_bytes + 8 * 1024 * 1024)
    vmem_limit = max(vmem_limit, 16 * 1024 * 1024)

    out = pl.pallas_call(
        _grl_bwd_kernel,
        out_shape=jax.ShapeDtypeStruct((rows, lane), orig_dtype),
        grid=(grid,),
        in_specs=[
            pl.BlockSpec((tile_m, lane), lambda i: (i, 0)),
            pl.BlockSpec(memory_space=pltpu.MemorySpace.SMEM),  # runtime -alpha scalar
        ],
        out_specs=pl.BlockSpec((tile_m, lane), lambda i: (i, 0)),
        input_output_aliases={0: 0},  # donate the incoming gradient buffer
        compiler_params=pltpu.CompilerParams(
            dimension_semantics=("parallel",),
            vmem_limit_bytes=int(vmem_limit),
        ),
    )(slab, neg_alpha)

    if needs_pad:
        out = out.reshape(-1)[:total]
    return out.reshape(orig_shape)


# ---------------------------------------------------------------------------
# custom_vjp: identity forward (no kernel, no copy), Pallas-scaled backward.
# alpha is a regular runtime argument; its cotangent is zero (PyTorch returns None).
# ---------------------------------------------------------------------------

@jax.custom_vjp
def gradient_reversal(x, alpha):
    return x  # identity forward: zero HBM traffic, zero kernel launches


def _grl_fwd(x, alpha):
    return x, alpha


def _grl_bwd(alpha, g):
    return _neg_scale_pallas(g, alpha), jnp.zeros_like(alpha)


gradient_reversal.defvjp(_grl_fwd, _grl_bwd)


class GradientReversalLayer:
    """JAX/Pallas equivalent of the PyTorch GradientReversalLayer."""

    def __init__(self, alpha=1.0):
        # Runtime scalar (SMEM operand of the backward kernel): ramping alpha per
        # training step does NOT retrace or recompile anything.
        self.alpha = jnp.asarray(alpha, jnp.float32)

    def __call__(self, x):
        return gradient_reversal(x, self.alpha)


# ---------------------------------------------------------------------------
# Smoke test
# ---------------------------------------------------------------------------

if __name__ == "__main__":
    key = jax.random.PRNGKey(0)
    x = jax.random.normal(key, (2, 4, 16, 16), dtype=jnp.float32)

    layer = GradientReversalLayer(alpha=1.0)

    # Forward: exact identity (no kernel, no copy).
    y = jax.block_until_ready(layer(x))
    assert y.shape == x.shape and y.dtype == x.dtype
    assert bool(jnp.array_equal(y, x)), "forward must be identity"

    # Backward through the Pallas kernel: d/dx sum(y) == -alpha everywhere.
    g = jax.block_until_ready(jax.grad(lambda t: jnp.sum(layer(t)))(x))
    assert bool(jnp.allclose(g, -1.0 * jnp.ones_like(x))), "backward must be -alpha * grad"

    # Non-trivial alpha under jit (alpha is a runtime scalar -> same compiled kernel).
    layer2 = GradientReversalLayer(alpha=0.37)
    g2 = jax.block_until_ready(jax.jit(jax.grad(lambda t: jnp.sum(layer2(t) * 2.0)))(x))
    assert bool(jnp.allclose(g2, -0.37 * 2.0 * jnp.ones_like(x), atol=1e-6))

    # Odd total size -> minimal-pad fallback path.
    x3 = jax.random.normal(jax.random.PRNGKey(1), (3, 5, 7, 11), dtype=jnp.float32)
    g3 = jax.block_until_ready(jax.grad(lambda t: jnp.sum(layer2(t)))(x3))
    assert bool(jnp.allclose(g3, -0.37 * jnp.ones_like(x3), atol=1e-6))

    # Multi-tile grid with a ragged (masked) final row-tile, forced via a tiny block.
    x4 = jax.random.normal(jax.random.PRNGKey(2), (40, 384), dtype=jnp.float32)
    o4 = jax.block_until_ready(_neg_scale_pallas(x4, 0.5, max_block_bytes=32 * 1024))
    assert bool(jnp.allclose(o4, -0.5 * x4, atol=1e-6))

    # bf16 gradients (dtype-aware sublane handling; f32 compute inside the kernel).
    x5 = jax.random.normal(jax.random.PRNGKey(3), (8, 256), dtype=jnp.bfloat16)
    o5 = jax.block_until_ready(_neg_scale_pallas(x5, 1.5))
    ref5 = -1.5 * x5.astype(jnp.float32)
    assert bool(jnp.allclose(o5.astype(jnp.float32), ref5, rtol=1e-2, atol=1e-2))

    print("KERNEL_OK")
</pallas_src>

<mosaic_0001>
module attributes {stable_mosaic.version = 11 : i64} {
  func.func @_grl_bwd_kernel(%arg0: i32, %arg1: memref<1x2048xf32, #tpu.memory_space<vmem>>, %arg2: memref<1xf32, #tpu.memory_space<smem>>, %arg3: memref<1x2048xf32, #tpu.memory_space<vmem>>) attributes {dimension_semantics = [#tpu.dimension_semantics<parallel>], iteration_bounds = array<i64: 1>, scalar_prefetch = 0 : i64, scratch_operands = 0 : i64, tpu.core_type = #tpu.core_type<tc>, window_params = [{transform_indices = @transform_0, window_bounds = array<i64: 1, 2048>}, {transform_indices = @transform_1, window_bounds = array<i64: 1>}, {transform_indices = @transform_2, window_bounds = array<i64: 1, 2048>}]} {
    %c0 = arith.constant 0 : index
    %c0_0 = arith.constant 0 : index
    %0 = vector.load %arg1[%c0, %c0_0] : memref<1x2048xf32, #tpu.memory_space<vmem>>, vector<1x2048xf32>
    %c0_1 = arith.constant 0 : index
    %1 = memref.load %arg2[%c0_1] : memref<1xf32, #tpu.memory_space<smem>>
    %2 = vector.broadcast %1 : f32 to vector<1x2048xf32>
    %3 = arith.mulf %0, %2 : vector<1x2048xf32>
    %c0_2 = arith.constant 0 : index
    %c0_3 = arith.constant 0 : index
    %4 = vector.load %arg3[%c0_2, %c0_3] : memref<1x2048xf32, #tpu.memory_space<vmem>>, vector<1x2048xf32>
    tpu.vector_store %arg3[%c0_2, %c0_3], %3 {strides = array<i32>} : memref<1x2048xf32, #tpu.memory_space<vmem>>, vector<1x2048xf32>,
    return
  }
  func.func @transform_0(%arg0: i32) -> (i32, i32) {
    %c0_i32 = arith.constant 0 : i32
    %c0_i32_0 = arith.constant 0 : i32
    return %arg0, %c0_i32 : i32, i32
  }
  func.func @transform_1(%arg0: i32) -> i32 {
    %c0_i32 = arith.constant 0 : i32
    %c0_i32_0 = arith.constant 0 : i32
    return %c0_i32 : i32
  }
  func.func @transform_2(%arg0: i32) -> (i32, i32) {
    %c0_i32 = arith.constant 0 : i32
    %c0_i32_0 = arith.constant 0 : i32
    return %arg0, %c0_i32 : i32, i32
  }
}

</mosaic_0001>

<bundles_post_ra>
// kernel: tpu_custom_call.1
= control target key start
LH: loop header
LB: loop body
LE: loop exit
PB: predicated region body
PF: predicated region fallthrough
CT: control target
= control target key end

     0   :  { %8 = vsyncpa [#allocation4], 0  ;;  %s142_s0 = inlined_call_operand.hbm [shape: f32[1,2048], index: 0, kind: input, shape index: {}, may-alias: {0,2}]   ;;  %s143_s1 = inlined_call_operand.<no memory space> [shape: f32[1], index: 1, kind: input, shape index: {}]   ;;  %s144_s2 = inlined_call_operand.hbm [shape: f32[1,2048], index: 2, kind: output, shape index: {}, may-alias: {0,2}]  }
   0x1   :  { %9 = vsyncpa [#allocation5], 0  ;;  %s98_s9 = smov [#allocation3]   ;;  %s50_s13 = scalar_lea.hbm %s142_s0, 256 }
   0x2   :  { %s16_s10 = sshll.u32 %s98_s9, 4  ;;  %p51_p0 = scmp.ne.s32.totalorder %s142_s0, %s50_s13  ;;  %s17_s10 = int_to_ptr.vmem [resolvable:$true] %s16_s10 }
   0x3   :  { %p54_p1 = scmp.lt.u32.totalorder %s50_s13, %s142_s0 }
   0x5   :  { %p56_p2 = pnand %p54_p1, %p51_p0 }
   0x7   :  { %59 = shalt.err (!%p56_p2)
}
   0x8   :  { %s60_s18 = scalar_lea.vmem %s17_s10, 256  ;;  %p65_p4 = scmp.lt.s32.totalorder %s17_s10, %s17_s10 }
   0x9   :  { %p61_p3 = scmp.ne.s32.totalorder %s17_s10, %s60_s18  ;;  %p66_p5 = scmp.lt.s32.totalorder %s60_s18, %s60_s18 }
   0xb   :  { %p67_p6 = por %p66_p5, %p65_p4 }
   0xd   :  { %p68_p7 = pnand %p67_p6, %p61_p3 }
   0xf   :  { %71 = shalt.err (!%p68_p7)
}
  0x10   :  { %19 = dma.hbm_to_vmem [thread:$0]  %s142_s0, 256, %s17_s10, [#allocation4]  }
  0x11   :  { %94 = dma.done.wait [#allocation4], 256  }
  0x12   :  { %95 = vsyncadd [#allocation4], 4294967040  ;;  %v28_v0 = vstv %s143_s1  ;;  %s99_s23 = smov [#allocation6]   ;;  %v25_v1 = vld [vmem:[#allocation3] sm:$0xff]  ;;  %v26_v2 = vld [vmem:[#allocation3 + $0x8] sm:$0xff] }
  0x13   :  { %s39_s24 = sshll.u32 %s99_s23, 4  ;;  %v29_v3 = vmul.f32 %v28_v0, %v25_v1  ;;  %v30_v4 = vmul.f32 %v28_v0, %v26_v2  ;;  %s40_s24 = int_to_ptr.vmem [resolvable:$true] %s39_s24 }
  0x14   :  { %s72_s25 = scalar_lea.vmem %s40_s24, 256  ;;  %p77_p9 = scmp.lt.s32.totalorder %s40_s24, %s40_s24 }
  0x15   :  { %31 = vst [vmem:[#allocation6] sm:$0xff] %v29_v3  ;;  %32 = vst [vmem:[#allocation6 + $0x8] sm:$0xff] %v30_v4  ;;  %p73_p8 = scmp.ne.s32.totalorder %s40_s24, %s72_s25  ;;  %p78_p10 = scmp.lt.s32.totalorder %s72_s25, %s72_s25 }
  0x17   :  { %p79_p11 = por %p78_p10, %p77_p9 }
  0x19   :  { %p80_p12 = pnand %p79_p11, %p73_p8 }
  0x1b   :  { %83 = shalt.err (!%p80_p12)
}
  0x1c   :  { %s84_s1 = scalar_lea.hbm %s144_s2, 256 }
  0x1d   :  { %p85_p13 = scmp.ne.s32.totalorder %s144_s2, %s84_s1  ;;  %p88_p0 = scmp.lt.u32.totalorder %s84_s1, %s144_s2 }
  0x1f   :  { %p90_p1 = pnand %p88_p0, %p85_p13 }
  0x21   :  { %93 = shalt.err (!%p90_p1)
}
  0x22   :  { %42 = dma.vmem_to_hbm [thread:$0]  %s40_s24, 256, %s144_s2, [#allocation5]  }
  0x23   :  { %96 = dma.done.wait [#allocation5], 256  }
  0x24   :  { %97 = vsyncadd [#allocation5], 4294967040 }
  0x25   :  { %46 = vsyncpa [#allocation4], 1 }
  0x26   :  { %47 = vsyncpa [#allocation5], 1 }

</bundles_post_ra>
